<compile_context>
chip_gen: v7x
topology: tpu7x:2x2x1
jax: 0.10.0
libtpu: 0.0.40
codegen_flags: <defaults>
</compile_context>

<pallas_src>
import jax
import jax.numpy as jnp
from jax.experimental import pallas as pl
from jax.experimental.pallas import tpu as pltpu

# ---- module-consistent sizes ----
OUTPUT_DIM  = 64                 # vocab
EMB_DIM     = 32
ENC_HID     = 32                 # bidirectional encoder -> feature dim 2*ENC_HID
DEC_HID     = 32
MAXOUT_POOL = 2
SRC_LEN     = 8
BATCH       = 4

ENC_DIM = 2 * ENC_HID                      # 64
RNN_IN  = EMB_DIM + ENC_DIM                # cat(embedded, weighted)      -> 96
ATTN_IN = DEC_HID + ENC_DIM                # cat(hidden_rep, enc_outputs) -> 96
MO_IN   = DEC_HID + ENC_DIM + EMB_DIM      # cat(output, weighted, emb)   -> 128

# ---- weight-slab row offsets (all multiples of 8 -> free static slices) ----
ROW_WE,   ROW_WHID, ROW_WIHE, ROW_WIHW = 0,   64,  96,  128
ROW_WMOH, ROW_WMOW, ROW_WMOE, ROW_WFC  = 192, 224, 288, 320
W_ROWS, W_COLS = 352, 128
B_ROWS   = 8
OUT_COLS = 128                             # lane-dense packed output: [pred(64) | h_new(32) | pad]


def _sigmoid(x):
    return 1.0 / (1.0 + jnp.exp(-x))


# ---------------------------------------------------------------------------
# Pallas kernel: attention + GRU cell + maxout + fc_out, fully batched over B.
# Everything fits in VMEM at these sizes; no grid needed.
# ---------------------------------------------------------------------------
def decoder_kernel(xh_ref, enc_ref, w_ref, b_ref, out_ref):
    B = xh_ref.shape[0]
    BS, D = enc_ref.shape
    S = BS // B
    H, E, V = DEC_HID, EMB_DIM, OUTPUT_DIM
    f32 = jnp.float32

    emb = xh_ref[:, 0:E]                   # [B, E]
    hid = xh_ref[:, E:E + H]               # [B, H]
    enc = enc_ref[...]                     # [B*S, D]

    # static slices out of the packed weight slab (offsets are compile-time constants)
    w_e    = w_ref[ROW_WE:ROW_WE + D,     0:H]        # [D, H]   attention enc projection
    w_hid  = w_ref[ROW_WHID:ROW_WHID + H, 0:4 * H]    # [H, 4H]  [Wh_attn | Whh(r,z,n)]
    w_ih_e = w_ref[ROW_WIHE:ROW_WIHE + E, 0:3 * H]    # [E, 3H]
    w_ih_w = w_ref[ROW_WIHW:ROW_WIHW + D, 0:3 * H]    # [D, 3H]
    w_mo_h = w_ref[ROW_WMOH:ROW_WMOH + H, 0:2 * H]    # [H, 2H]  (pools de-interleaved)
    w_mo_w = w_ref[ROW_WMOW:ROW_WMOW + D, 0:2 * H]    # [D, 2H]
    w_mo_e = w_ref[ROW_WMOE:ROW_WMOE + E, 0:2 * H]    # [E, 2H]
    w_fc   = w_ref[ROW_WFC:ROW_WFC + H,   0:V]        # [H, V]

    bias  = b_ref[...]                                # [8, 128]
    battn = bias[0:1, 0:H]
    v_row = bias[1:2, 0:H]
    b_ih  = bias[2:3, 0:3 * H]
    b_hh  = bias[3:4, 0:3 * H]
    b_mo  = bias[4:5, 0:2 * H]
    b_fc  = bias[5:6, 0:V]

    # --- hidden path: ONE matmul gives the attention projection and all GRU hidden gates
    h_mm  = jnp.dot(hid, w_hid, preferred_element_type=f32)          # [B, 4H]
    hproj = h_mm[:, 0:H]                                             # [B, H]
    gh    = h_mm[:, H:4 * H] + b_hh                                  # [B, 3H] (r,z,n)

    # --- Bahdanau attention: softmax_s( v . tanh(W_h h + W_e enc_s + b) ), batched
    eproj  = jnp.dot(enc, w_e, preferred_element_type=f32)           # [B*S, H]
    energy = jnp.tanh(eproj.reshape(B, S, H) + hproj[:, None, :] + battn)   # [B, S, H]
    scores = jnp.sum(energy * v_row, axis=-1, keepdims=True)         # [B, S, 1]
    m    = jnp.max(scores, axis=1, keepdims=True)
    ex   = jnp.exp(scores - m)
    attn = ex / jnp.sum(ex, axis=1, keepdims=True)                   # [B, S, 1]
    weighted = jnp.sum(attn * enc.reshape(B, S, D), axis=1)          # [B, D]  (== bmm)

    # --- single GRU step (PyTorch gate order r, z, n); concat replaced by split matmuls
    gi = (jnp.dot(emb, w_ih_e, preferred_element_type=f32)
          + jnp.dot(weighted, w_ih_w, preferred_element_type=f32) + b_ih)   # [B, 3H]
    r = _sigmoid(gi[:, 0:H] + gh[:, 0:H])
    z = _sigmoid(gi[:, H:2 * H] + gh[:, H:2 * H])
    n = jnp.tanh(gi[:, 2 * H:3 * H] + r * gh[:, 2 * H:3 * H])
    h_new = (1.0 - z) * n + z * hid                                  # [B, H]

    # --- Maxout (one fused matmul, pools de-interleaved to [pool0 | pool1]) + fc_out
    mo = (jnp.dot(h_new, w_mo_h, preferred_element_type=f32)
          + jnp.dot(weighted, w_mo_w, preferred_element_type=f32)
          + jnp.dot(emb, w_mo_e, preferred_element_type=f32) + b_mo)        # [B, 2H]
    maxed = jnp.maximum(mo[:, 0:H], mo[:, H:2 * H])                         # [B, H]
    pred  = jnp.dot(maxed, w_fc, preferred_element_type=f32) + b_fc         # [B, V]

    # packed, lane-dense output slab
    out_ref[:, 0:V]          = pred
    out_ref[:, V:V + H]      = h_new
    out_ref[:, V + H:OUT_COLS] = jnp.zeros((B, OUT_COLS - V - H), f32)


# ---------------------------------------------------------------------------
# Parameter setup (deterministic, PyTorch-layout shapes from the module __init__)
# ---------------------------------------------------------------------------
def init_params(key):
    ks = jax.random.split(key, 12)

    def rnd(k, shape, scale=0.1):
        return (scale * jax.random.normal(k, shape)).astype(jnp.float32)

    return dict(
        emb_w  = rnd(ks[0],  (OUTPUT_DIM, EMB_DIM)),            # nn.Embedding
        attn_w = rnd(ks[1],  (DEC_HID, ATTN_IN)),               # attention.attn.weight
        attn_b = rnd(ks[2],  (DEC_HID,)),                       # attention.attn.bias
        v_w    = rnd(ks[3],  (1, DEC_HID)),                     # attention.v.weight (no bias)
        w_ih   = rnd(ks[4],  (3 * DEC_HID, RNN_IN)),            # GRU weight_ih_l0 (r,z,n)
        w_hh   = rnd(ks[5],  (3 * DEC_HID, DEC_HID)),           # GRU weight_hh_l0
        b_ih   = rnd(ks[6],  (3 * DEC_HID,)),
        b_hh   = rnd(ks[7],  (3 * DEC_HID,)),
        mo_w   = rnd(ks[8],  (DEC_HID * MAXOUT_POOL, MO_IN)),   # Maxout.lin
        mo_b   = rnd(ks[9],  (DEC_HID * MAXOUT_POOL,)),
        fc_w   = rnd(ks[10], (OUTPUT_DIM, DEC_HID)),            # fc_out
        fc_b   = rnd(ks[11], (OUTPUT_DIM,)),
    )


def pack_params(P):
    """Transpose / fuse / de-interleave weights and pack into two lane-dense slabs."""
    H, E, D, V = DEC_HID, EMB_DIM, ENC_DIM, OUTPUT_DIM

    wh  = P['attn_w'][:, :H].T                           # [H, H]  (hidden part of attn.attn)
    we  = P['attn_w'][:, H:].T                           # [D, H]  (encoder part)
    whh = P['w_hh'].T                                    # [H, 3H] (r,z,n)
    w_hid = jnp.concatenate([wh, whh], axis=1)           # [H, 4H] fused hidden-side matmul

    wih   = P['w_ih'].T                                  # [RNN_IN, 3H]
    wih_e = wih[:E, :]                                   # rows <- embedded
    wih_w = wih[E:, :]                                   # rows <- weighted context

    # Maxout: linear-output column j -> (unit j//pool, pool j%pool); de-interleave to [pool0|pool1]
    wmo    = P['mo_w'].T                                 # [MO_IN, H*POOL]
    wmo_de = jnp.concatenate([wmo[:, p::MAXOUT_POOL] for p in range(MAXOUT_POOL)], axis=1)
    wmo_h, wmo_w, wmo_e = wmo_de[:H], wmo_de[H:H + D], wmo_de[H + D:]

    wfc = P['fc_w'].T                                    # [H, V]

    W = jnp.zeros((W_ROWS, W_COLS), jnp.float32)
    W = W.at[ROW_WE:ROW_WE + D,     0:H].set(we)
    W = W.at[ROW_WHID:ROW_WHID + H, 0:4 * H].set(w_hid)
    W = W.at[ROW_WIHE:ROW_WIHE + E, 0:3 * H].set(wih_e)
    W = W.at[ROW_WIHW:ROW_WIHW + D, 0:3 * H].set(wih_w)
    W = W.at[ROW_WMOH:ROW_WMOH + H, 0:2 * H].set(wmo_h)
    W = W.at[ROW_WMOW:ROW_WMOW + D, 0:2 * H].set(wmo_w)
    W = W.at[ROW_WMOE:ROW_WMOE + E, 0:2 * H].set(wmo_e)
    W = W.at[ROW_WFC:ROW_WFC + H,   0:V].set(wfc)

    bmo_de = jnp.concatenate([P['mo_b'][p::MAXOUT_POOL] for p in range(MAXOUT_POOL)])
    Bs = jnp.zeros((B_ROWS, W_COLS), jnp.float32)
    Bs = Bs.at[0, 0:H].set(P['attn_b'])
    Bs = Bs.at[1, 0:H].set(P['v_w'][0])
    Bs = Bs.at[2, 0:3 * H].set(P['b_ih'])
    Bs = Bs.at[3, 0:3 * H].set(P['b_hh'])
    Bs = Bs.at[4, 0:2 * H].set(bmo_de)
    Bs = Bs.at[5, 0:V].set(P['fc_b'])

    return dict(emb_w=P['emb_w'], w_slab=W, b_slab=Bs)


@jax.jit
def decoder_forward(tokens, hidden, encoder_outputs, packed):
    """tokens: [B] int32, hidden: [B, H], encoder_outputs: [S, B, 2*ENC_HID] (PyTorch axis order)."""
    # TODO(synk): dropout is treated as eval-mode identity (no in-kernel RNG mask).
    B = tokens.shape[0]
    S = encoder_outputs.shape[0]
    embedded = packed['emb_w'][tokens]                              # [B, E] (gather in glue)
    xh = jnp.concatenate([embedded, hidden], axis=1)                # [B, E+H]
    enc_flat = jnp.transpose(encoder_outputs, (1, 0, 2)).reshape(B * S, ENC_DIM)

    vmem = pl.BlockSpec(memory_space=pltpu.MemorySpace.VMEM)
    out = pl.pallas_call(
        decoder_kernel,
        out_shape=jax.ShapeDtypeStruct((B, OUT_COLS), jnp.float32),
        in_specs=[vmem, vmem, vmem, vmem],
        out_specs=vmem,
    )(xh, enc_flat, packed['w_slab'], packed['b_slab'])
    return out[:, :OUTPUT_DIM], out[:, OUTPUT_DIM:OUTPUT_DIM + DEC_HID]


# ---------------------------------------------------------------------------
# Pure-JAX reference mirroring the PyTorch forward (for verification)
# ---------------------------------------------------------------------------
def reference_forward(tokens, hidden, encoder_outputs, P):
    H = DEC_HID
    embedded = P['emb_w'][tokens]                                 # [B, E]
    S = encoder_outputs.shape[0]
    enc_p = jnp.transpose(encoder_outputs, (1, 0, 2))             # [B, S, D]
    hid_rep = jnp.repeat(hidden[:, None, :], S, axis=1)           # [B, S, H]
    cat = jnp.concatenate([hid_rep, enc_p], axis=2)               # [B, S, H+D]
    energy = jnp.tanh(jnp.einsum('bsf,hf->bsh', cat, P['attn_w']) + P['attn_b'])
    scores = jnp.einsum('bsh,h->bs', energy, P['v_w'][0])
    a = jax.nn.softmax(scores, axis=1)
    weighted = jnp.einsum('bs,bsd->bd', a, enc_p)
    rnn_in = jnp.concatenate([embedded, weighted], axis=1)
    gi = rnn_in @ P['w_ih'].T + P['b_ih']
    gh = hidden @ P['w_hh'].T + P['b_hh']
    r = _sigmoid(gi[:, :H] + gh[:, :H])
    z = _sigmoid(gi[:, H:2 * H] + gh[:, H:2 * H])
    n = jnp.tanh(gi[:, 2 * H:] + r * gh[:, 2 * H:])
    h_new = (1.0 - z) * n + z * hidden
    mo_in = jnp.concatenate([h_new, weighted, embedded], axis=1)
    mo = mo_in @ P['mo_w'].T + P['mo_b']
    m = mo.reshape(tokens.shape[0], H, MAXOUT_POOL).max(axis=-1)
    pred = m @ P['fc_w'].T + P['fc_b']
    return pred, h_new


if __name__ == "__main__":
    key = jax.random.PRNGKey(0)
    kparam, ktok, khid, kenc = jax.random.split(key, 4)
    P = init_params(kparam)
    packed = pack_params(P)

    tokens = jax.random.randint(ktok, (BATCH,), 0, OUTPUT_DIM, dtype=jnp.int32)
    hidden = (0.1 * jax.random.normal(khid, (BATCH, DEC_HID))).astype(jnp.float32)
    encoder_outputs = (0.1 * jax.random.normal(kenc, (SRC_LEN, BATCH, ENC_DIM))).astype(jnp.float32)

    pred, h_new = decoder_forward(tokens, hidden, encoder_outputs, packed)
    jax.block_until_ready((pred, h_new))

    pred_ref, h_ref = reference_forward(tokens, hidden, encoder_outputs, P)
    assert pred.shape == (BATCH, OUTPUT_DIM) and h_new.shape == (BATCH, DEC_HID)
    assert jnp.allclose(pred, pred_ref, atol=1e-4, rtol=1e-4), "prediction mismatch"
    assert jnp.allclose(h_new, h_ref, atol=1e-4, rtol=1e-4), "hidden mismatch"
    print("KERNEL_OK")
</pallas_src>

<mosaic_0001>
module attributes {stable_mosaic.version = 11 : i64} {
  func.func @decoder_kernel(%arg0: memref<4x64xf32, #tpu.memory_space<vmem>>, %arg1: memref<32x64xf32, #tpu.memory_space<vmem>>, %arg2: memref<352x128xf32, #tpu.memory_space<vmem>>, %arg3: memref<8x128xf32, #tpu.memory_space<vmem>>, %arg4: memref<4x128xf32, #tpu.memory_space<vmem>>) attributes {dimension_semantics = [], scalar_prefetch = 0 : i64, scratch_operands = 0 : i64, tpu.core_type = #tpu.core_type<tc>} {
    %c0 = arith.constant 0 : index
    %c0_0 = arith.constant 0 : index
    %0 = vector.load %arg0[%c0, %c0_0] : memref<4x64xf32, #tpu.memory_space<vmem>>, vector<4x32xf32>
    %c0_1 = arith.constant 0 : index
    %c32 = arith.constant 32 : index
    %1 = vector.load %arg0[%c0_1, %c32] : memref<4x64xf32, #tpu.memory_space<vmem>>, vector<4x32xf32>
    %c0_2 = arith.constant 0 : index
    %c0_3 = arith.constant 0 : index
    %2 = vector.load %arg1[%c0_2, %c0_3] : memref<32x64xf32, #tpu.memory_space<vmem>>, vector<32x64xf32>
    %c0_4 = arith.constant 0 : index
    %c0_5 = arith.constant 0 : index
    %3 = vector.load %arg2[%c0_4, %c0_5] : memref<352x128xf32, #tpu.memory_space<vmem>>, vector<64x32xf32>
    %c64 = arith.constant 64 : index
    %c0_6 = arith.constant 0 : index
    %4 = vector.load %arg2[%c64, %c0_6] : memref<352x128xf32, #tpu.memory_space<vmem>>, vector<32x128xf32>
    %c96 = arith.constant 96 : index
    %c0_7 = arith.constant 0 : index
    %5 = vector.load %arg2[%c96, %c0_7] : memref<352x128xf32, #tpu.memory_space<vmem>>, vector<32x96xf32>
    %c128 = arith.constant 128 : index
    %c0_8 = arith.constant 0 : index
    %6 = vector.load %arg2[%c128, %c0_8] : memref<352x128xf32, #tpu.memory_space<vmem>>, vector<64x96xf32>
    %c192 = arith.constant 192 : index
    %c0_9 = arith.constant 0 : index
    %7 = vector.load %arg2[%c192, %c0_9] : memref<352x128xf32, #tpu.memory_space<vmem>>, vector<32x64xf32>
    %c224 = arith.constant 224 : index
    %c0_10 = arith.constant 0 : index
    %8 = vector.load %arg2[%c224, %c0_10] : memref<352x128xf32, #tpu.memory_space<vmem>>, vector<64x64xf32>
    %c288 = arith.constant 288 : index
    %c0_11 = arith.constant 0 : index
    %9 = vector.load %arg2[%c288, %c0_11] : memref<352x128xf32, #tpu.memory_space<vmem>>, vector<32x64xf32>
    %c320 = arith.constant 320 : index
    %c0_12 = arith.constant 0 : index
    %10 = vector.load %arg2[%c320, %c0_12] : memref<352x128xf32, #tpu.memory_space<vmem>>, vector<32x64xf32>
    %c0_13 = arith.constant 0 : index
    %c0_14 = arith.constant 0 : index
    %11 = vector.load %arg3[%c0_13, %c0_14] : memref<8x128xf32, #tpu.memory_space<vmem>>, vector<8x128xf32>
    %12 = vector.extract_strided_slice %11 {offsets = [0, 0], sizes = [1, 32], strides = [1, 1]} : vector<8x128xf32> to vector<1x32xf32>
    %13 = vector.extract_strided_slice %11 {offsets = [1, 0], sizes = [1, 32], strides = [1, 1]} : vector<8x128xf32> to vector<1x32xf32>
    %14 = vector.extract_strided_slice %11 {offsets = [2, 0], sizes = [1, 96], strides = [1, 1]} : vector<8x128xf32> to vector<1x96xf32>
    %15 = vector.extract_strided_slice %11 {offsets = [3, 0], sizes = [1, 96], strides = [1, 1]} : vector<8x128xf32> to vector<1x96xf32>
    %16 = vector.extract_strided_slice %11 {offsets = [4, 0], sizes = [1, 64], strides = [1, 1]} : vector<8x128xf32> to vector<1x64xf32>
    %17 = vector.extract_strided_slice %11 {offsets = [5, 0], sizes = [1, 64], strides = [1, 1]} : vector<8x128xf32> to vector<1x64xf32>
    %cst = arith.constant dense<0.000000e+00> : vector<4x128xf32>
    %18 = tpu.matmul %1, %4, %cst {dimension_numbers = #tpu.dot_dimension_numbers<[1], [0], [0], [1], [0, 0, 1, 1], [], []>} : vector<4x32xf32>, vector<32x128xf32>, vector<4x128xf32> -> vector<4x128xf32>
    %19 = vector.extract_strided_slice %18 {offsets = [0, 0], sizes = [4, 32], strides = [1, 1]} : vector<4x128xf32> to vector<4x32xf32>
    %20 = vector.extract_strided_slice %18 {offsets = [0, 32], sizes = [4, 96], strides = [1, 1]} : vector<4x128xf32> to vector<4x96xf32>
    %21 = vector.broadcast %15 : vector<1x96xf32> to vector<4x96xf32>
    %22 = arith.addf %20, %21 : vector<4x96xf32>
    %cst_15 = arith.constant dense<0.000000e+00> : vector<32x32xf32>
    %23 = tpu.matmul %2, %3, %cst_15 {dimension_numbers = #tpu.dot_dimension_numbers<[1], [0], [0], [1], [0, 0, 1, 1], [], []>} : vector<32x64xf32>, vector<64x32xf32>, vector<32x32xf32> -> vector<32x32xf32>
    %24 = vector.shape_cast %23 : vector<32x32xf32> to vector<4x8x32xf32>
    %25 = vector.shape_cast %19 : vector<4x32xf32> to vector<4x1x32xf32>
    %26 = vector.broadcast %25 : vector<4x1x32xf32> to vector<4x8x32xf32>
    %27 = arith.addf %24, %26 : vector<4x8x32xf32>
    %28 = vector.shape_cast %12 : vector<1x32xf32> to vector<1x1x32xf32>
    %29 = vector.broadcast %28 : vector<1x1x32xf32> to vector<4x8x32xf32>
    %30 = arith.addf %27, %29 : vector<4x8x32xf32>
    %31 = math.tanh %30 : vector<4x8x32xf32>
    %32 = vector.shape_cast %13 : vector<1x32xf32> to vector<1x1x32xf32>
    %33 = vector.broadcast %32 : vector<1x1x32xf32> to vector<4x8x32xf32>
    %34 = arith.mulf %31, %33 : vector<4x8x32xf32>
    %cst_16 = arith.constant dense<0.000000e+00> : vector<4x8xf32>
    %35 = vector.multi_reduction <add>, %34, %cst_16 [2] : vector<4x8x32xf32> to vector<4x8xf32>
    %36 = vector.shape_cast %35 : vector<4x8xf32> to vector<4x8x1xf32>
    %cst_17 = arith.constant dense<0xFF800000> : vector<4x1xf32>
    %37 = vector.multi_reduction <maximumf>, %36, %cst_17 [1] : vector<4x8x1xf32> to vector<4x1xf32>
    %38 = vector.shape_cast %37 : vector<4x1xf32> to vector<4x1x1xf32>
    %39 = vector.broadcast %38 : vector<4x1x1xf32> to vector<4x8x1xf32>
    %40 = arith.subf %36, %39 : vector<4x8x1xf32>
    %41 = math.exp %40 : vector<4x8x1xf32>
    %cst_18 = arith.constant dense<0.000000e+00> : vector<4x1xf32>
    %42 = vector.multi_reduction <add>, %41, %cst_18 [1] : vector<4x8x1xf32> to vector<4x1xf32>
    %43 = vector.shape_cast %42 : vector<4x1xf32> to vector<4x1x1xf32>
    %44 = vector.broadcast %43 : vector<4x1x1xf32> to vector<4x8x1xf32>
    %45 = arith.divf %41, %44 : vector<4x8x1xf32>
    %46 = vector.shape_cast %2 : vector<32x64xf32> to vector<4x8x64xf32>
    %47 = vector.broadcast %45 : vector<4x8x1xf32> to vector<4x8x64xf32>
    %48 = arith.mulf %47, %46 : vector<4x8x64xf32>
    %cst_19 = arith.constant dense<0.000000e+00> : vector<4x64xf32>
    %49 = vector.multi_reduction <add>, %48, %cst_19 [1] : vector<4x8x64xf32> to vector<4x64xf32>
    %cst_20 = arith.constant dense<0.000000e+00> : vector<4x96xf32>
    %50 = tpu.matmul %0, %5, %cst_20 {dimension_numbers = #tpu.dot_dimension_numbers<[1], [0], [0], [1], [0, 0, 1, 1], [], []>} : vector<4x32xf32>, vector<32x96xf32>, vector<4x96xf32> -> vector<4x96xf32>
    %cst_21 = arith.constant dense<0.000000e+00> : vector<4x96xf32>
    %51 = tpu.matmul %49, %6, %cst_21 {dimension_numbers = #tpu.dot_dimension_numbers<[1], [0], [0], [1], [0, 0, 1, 1], [], []>} : vector<4x64xf32>, vector<64x96xf32>, vector<4x96xf32> -> vector<4x96xf32>
    %52 = arith.addf %50, %51 : vector<4x96xf32>
    %53 = vector.broadcast %14 : vector<1x96xf32> to vector<4x96xf32>
    %54 = arith.addf %52, %53 : vector<4x96xf32>
    %55 = vector.extract_strided_slice %54 {offsets = [0, 0], sizes = [4, 32], strides = [1, 1]} : vector<4x96xf32> to vector<4x32xf32>
    %56 = vector.extract_strided_slice %22 {offsets = [0, 0], sizes = [4, 32], strides = [1, 1]} : vector<4x96xf32> to vector<4x32xf32>
    %57 = arith.addf %55, %56 : vector<4x32xf32>
    %cst_22 = arith.constant 0.000000e+00 : f32
    %58 = vector.broadcast %cst_22 : f32 to vector<4x32xf32>
    %59 = arith.subf %58, %57 : vector<4x32xf32>
    %60 = math.exp %59 : vector<4x32xf32>
    %cst_23 = arith.constant 1.000000e+00 : f32
    %61 = vector.broadcast %cst_23 : f32 to vector<4x32xf32>
    %62 = arith.addf %61, %60 : vector<4x32xf32>
    %cst_24 = arith.constant 1.000000e+00 : f32
    %63 = vector.broadcast %cst_24 : f32 to vector<4x32xf32>
    %64 = arith.divf %63, %62 : vector<4x32xf32>
    %65 = vector.extract_strided_slice %54 {offsets = [0, 32], sizes = [4, 32], strides = [1, 1]} : vector<4x96xf32> to vector<4x32xf32>
    %66 = vector.extract_strided_slice %22 {offsets = [0, 32], sizes = [4, 32], strides = [1, 1]} : vector<4x96xf32> to vector<4x32xf32>
    %67 = arith.addf %65, %66 : vector<4x32xf32>
    %cst_25 = arith.constant 0.000000e+00 : f32
    %68 = vector.broadcast %cst_25 : f32 to vector<4x32xf32>
    %69 = arith.subf %68, %67 : vector<4x32xf32>
    %70 = math.exp %69 : vector<4x32xf32>
    %cst_26 = arith.constant 1.000000e+00 : f32
    %71 = vector.broadcast %cst_26 : f32 to vector<4x32xf32>
    %72 = arith.addf %71, %70 : vector<4x32xf32>
    %cst_27 = arith.constant 1.000000e+00 : f32
    %73 = vector.broadcast %cst_27 : f32 to vector<4x32xf32>
    %74 = arith.divf %73, %72 : vector<4x32xf32>
    %75 = vector.extract_strided_slice %54 {offsets = [0, 64], sizes = [4, 32], strides = [1, 1]} : vector<4x96xf32> to vector<4x32xf32>
    %76 = vector.extract_strided_slice %22 {offsets = [0, 64], sizes = [4, 32], strides = [1, 1]} : vector<4x96xf32> to vector<4x32xf32>
    %77 = arith.mulf %64, %76 : vector<4x32xf32>
    %78 = arith.addf %75, %77 : vector<4x32xf32>
    %79 = math.tanh %78 : vector<4x32xf32>
    %cst_28 = arith.constant 1.000000e+00 : f32
    %80 = vector.broadcast %cst_28 : f32 to vector<4x32xf32>
    %81 = arith.subf %80, %74 : vector<4x32xf32>
    %82 = arith.mulf %81, %79 : vector<4x32xf32>
    %83 = arith.mulf %74, %1 : vector<4x32xf32>
    %84 = arith.addf %82, %83 : vector<4x32xf32>
    %cst_29 = arith.constant dense<0.000000e+00> : vector<4x64xf32>
    %85 = tpu.matmul %84, %7, %cst_29 {dimension_numbers = #tpu.dot_dimension_numbers<[1], [0], [0], [1], [0, 0, 1, 1], [], []>} : vector<4x32xf32>, vector<32x64xf32>, vector<4x64xf32> -> vector<4x64xf32>
    %cst_30 = arith.constant dense<0.000000e+00> : vector<4x64xf32>
    %86 = tpu.matmul %49, %8, %cst_30 {dimension_numbers = #tpu.dot_dimension_numbers<[1], [0], [0], [1], [0, 0, 1, 1], [], []>} : vector<4x64xf32>, vector<64x64xf32>, vector<4x64xf32> -> vector<4x64xf32>
    %87 = arith.addf %85, %86 : vector<4x64xf32>
    %cst_31 = arith.constant dense<0.000000e+00> : vector<4x64xf32>
    %88 = tpu.matmul %0, %9, %cst_31 {dimension_numbers = #tpu.dot_dimension_numbers<[1], [0], [0], [1], [0, 0, 1, 1], [], []>} : vector<4x32xf32>, vector<32x64xf32>, vector<4x64xf32> -> vector<4x64xf32>
    %89 = arith.addf %87, %88 : vector<4x64xf32>
    %90 = vector.broadcast %16 : vector<1x64xf32> to vector<4x64xf32>
    %91 = arith.addf %89, %90 : vector<4x64xf32>
    %92 = vector.extract_strided_slice %91 {offsets = [0, 0], sizes = [4, 32], strides = [1, 1]} : vector<4x64xf32> to vector<4x32xf32>
    %93 = vector.extract_strided_slice %91 {offsets = [0, 32], sizes = [4, 32], strides = [1, 1]} : vector<4x64xf32> to vector<4x32xf32>
    %94 = arith.maximumf %92, %93 : vector<4x32xf32>
    %cst_32 = arith.constant dense<0.000000e+00> : vector<4x64xf32>
    %95 = tpu.matmul %94, %10, %cst_32 {dimension_numbers = #tpu.dot_dimension_numbers<[1], [0], [0], [1], [0, 0, 1, 1], [], []>} : vector<4x32xf32>, vector<32x64xf32>, vector<4x64xf32> -> vector<4x64xf32>
    %96 = vector.broadcast %17 : vector<1x64xf32> to vector<4x64xf32>
    %97 = arith.addf %95, %96 : vector<4x64xf32>
    %c0_33 = arith.constant 0 : index
    %c0_34 = arith.constant 0 : index
    %98 = vector.load %arg4[%c0_33, %c0_34] : memref<4x128xf32, #tpu.memory_space<vmem>>, vector<4x64xf32>
    tpu.vector_store %arg4[%c0_33, %c0_34], %97 {strides = array<i32>} : memref<4x128xf32, #tpu.memory_space<vmem>>, vector<4x64xf32>,
    %c0_35 = arith.constant 0 : index
    %c64_36 = arith.constant 64 : index
    %99 = vector.load %arg4[%c0_35, %c64_36] : memref<4x128xf32, #tpu.memory_space<vmem>>, vector<4x32xf32>
    tpu.vector_store %arg4[%c0_35, %c64_36], %84 {strides = array<i32>} : memref<4x128xf32, #tpu.memory_space<vmem>>, vector<4x32xf32>,
    %cst_37 = arith.constant 0.000000e+00 : f32
    %100 = vector.broadcast %cst_37 : f32 to vector<4x32xf32>
    %c0_38 = arith.constant 0 : index
    %c96_39 = arith.constant 96 : index
    %101 = vector.load %arg4[%c0_38, %c96_39] : memref<4x128xf32, #tpu.memory_space<vmem>>, vector<4x32xf32>
    tpu.vector_store %arg4[%c0_38, %c96_39], %100 {strides = array<i32>} : memref<4x128xf32, #tpu.memory_space<vmem>>, vector<4x32xf32>,
    return
  }
}

</mosaic_0001>

<bundles_post_ra>
// kernel: decoder_forward.1
= control target key start
LH: loop header
LB: loop body
LE: loop exit
PB: predicated region body
PF: predicated region fallthrough
CT: control target
= control target key end

     0   :  { %9 = vsyncpa [#allocation3], 0  ;;  %s1265_s15 = smov [#allocation2]   ;;  %s1442_s0 = inlined_call_operand.vmem [shape: f32[4,64], index: 0, kind: input, shape index: {}]   ;;  %s1443_s1 = inlined_call_operand.vmem [shape: f32[32,64], index: 1, kind: input, shape index: {}]   ;;  %s1444_s2 = inlined_call_operand.hbm [shape: f32[352,128], index: 2, kind: input, shape index: {}]   ;;  %s1445_s3 = inlined_call_operand.vmem [shape: f32[8,128], index: 3, kind: input, shape index: {}]   ;;  %s1446_s4 = inlined_call_operand.vmem [shape: f32[4,128], index: 4, kind: output, shape index: {}]  }
   0x1   :  { %s19_s16 = sshll.u32 %s1265_s15, 4  ;;  %s1241_s19 = scalar_lea.hbm %s1444_s2, 5632  ;;  %s20_s16 = int_to_ptr.vmem [resolvable:$true] %s19_s16 }
   0x2   :  { %p1242_p0 = scmp.ne.s32.totalorder %s1444_s2, %s1241_s19  ;;  %p1245_p1 = scmp.lt.u32.totalorder %s1241_s19, %s1444_s2 }
   0x4   :  { %p1247_p2 = pnand %p1245_p1, %p1242_p0 }
   0x6   :  { %1250 = shalt.err (!%p1247_p2)
}
   0x7   :  { %s1251_s24 = scalar_lea.vmem %s20_s16, 5632  ;;  %p1256_p4 = scmp.lt.s32.totalorder %s20_s16, %s20_s16 }
   0x8   :  { %p1252_p3 = scmp.ne.s32.totalorder %s20_s16, %s1251_s24  ;;  %p1257_p5 = scmp.lt.s32.totalorder %s1251_s24, %s1251_s24 }
   0xa   :  { %p1258_p6 = por %p1257_p5, %p1256_p4 }
   0xc   :  { %p1259_p7 = pnand %p1258_p6, %p1252_p3 }
   0xe   :  { %1262 = shalt.err (!%p1259_p7)
}
   0xf   :  { %s1266_s25 = smov 128   ;;  %s1267_s26 = smov 8  }
  0x10   :  { %25 = dma.hbm_to_vmem [thread:$0]  %s1444_s2, 5632, %s20_s16, [#allocation3], %s1266_s25, %s1266_s25, %s1267_s26  }
  0x11   :  { %1263 = dma.done.wait [#allocation3], 5632  }
  0x12   :  { %1264 = vsyncadd [#allocation3], 4294961664  ;;  %v1268_v0 = vmov 0.0|0.0   ;;  %vm1269_vm0 = vmmov 0   ;;  %v1270_v1 = vmov 0.0   ;;  %v36_v3 = vld [vmem:[#allocation2] sm:$0xff]  ;;  %v157_v30 = vlaneseq }
  0x13   :  { %1131 = vmatprep.subr.bf16.mxu0 %v1268_v0  ;;  %1024 = vmatprep.mubr.msk.f32.mxu0 %vm1269_vm0, %v1270_v1  ;;  %v1318_v2 = vld [vmem:[%s1442_s0] sm:$0xf]  ;;  %v37_v4 = vld [vmem:[#allocation2 + $0x8] sm:$0xff]  ;;  %s1271_s5 = smov 96   ;;  %v38_v6 = vld [vmem:[#allocation2 + $0x10] sm:$0xff]  ;;  %vm166_vm1 = vcmask 523264  }
  0x14   :  { %82 = vrot.lane.b32.xlu0 %v1318_v2, %s1271_s5  ;;  %v1137_v5 = vpack.c.bf16 %v37_v4, %v36_v3  ;;  %v39_v7 = vld [vmem:[#allocation2 + $0x18] sm:$0xff]  ;;  %v44_v8 = vld [vmem:[#allocation2 + $0x40] sm:$0xff]  ;;  %v45_v10 = vld [vmem:[#allocation2 + $0x48] sm:$0xff]  ;;  %vm84_vm2 = vcmask 261120   ;;  %v1272_v31 = vmov 1966171168  }
  0x15   :  { %v1141_v9 = vpack.c.bf16 %v39_v7, %v38_v6  ;;  %v40_v11 = vld [vmem:[#allocation2 + $0x20] sm:$0xff]  ;;  %v41_v12 = vld [vmem:[#allocation2 + $0x28] sm:$0xff]  ;;  %v1132_v13 = vpack.c.bf16 %v45_v10, %v44_v8  ;;  %v46_v14 = vld [vmem:[#allocation2 + $0x50] sm:$0xff]  ;;  %v266_v32 = vunpack.c.l.s4 %v1272_v31  ;;  %v1358_v33 = vshrl.u32 %v157_v30, 7  ;;  %s1274_s13 = smov 64  }
  0x16   :  { %1138 = vmatprep.subr.bf16.mxu1 %v1137_v5  ;;  %v47_v15 = vld [vmem:[#allocation2 + $0x58] sm:$0xff]  ;;  %v1325_v16 = vld [vmem:[%s1443_s1] sm:$0xff]  ;;  %v1145_v17 = vpack.c.bf16 %v41_v12, %v40_v11  ;;  %v42_v19 = vld [vmem:[#allocation2 + $0x30] sm:$0xff]  ;;  %vm449_vm3 = vcmask 1041409   ;;  %vm451_vm4 = vcmask 1042434   ;;  %vm453_vm5 = vcmask 1043459  }
  0x17   :  { %1140 = vmatpush3.bf16.msra.mxu1 %v1137_v5  ;;  %1133 = vmatpush3.bf16.msra.mxu0 %v1132_v13  ;;  %v1135_v18 = vpack.c.bf16 %v47_v15, %v46_v14  ;;  %v43_v20 = vld [vmem:[#allocation2 + $0x38] sm:$0xff]  ;;  %v1334_v22 = vld [vmem:[%s1443_s1 + $0x8] sm:$0xff]  ;;  %v1339_v23 = vld [vmem:[%s1443_s1 + $0x10] sm:$0xff]  ;;  %v267_v34 = vunpack.c.0.s8 %v266_v32  ;;  %v291_v39 = vsub.s32 0, %v1358_v33  ;;  %v327_v59 = vsub.s32 1, %v1358_v33 }
  0x18   :  { %1142 = vmatprep.subr.bf16.mxu1 %v1141_v9  ;;  %1134 = vmatprep.subr.bf16.mxu0 %v1268_v0  ;;  %v1149_v21 = vpack.c.bf16 %v43_v20, %v42_v19  ;;  %v1349_v24 = vld [vmem:[%s1443_s1 + $0x18] sm:$0xff]  ;;  %v1368_v40 = vld [vmem:[%s1445_s3] sm:$0xff]  ;;  %v159_v12 = vsub.s32 3, %v1358_v33  ;;  %s1273_s3 = smov 32   ;;  %v53_v15 = vld [vmem:[#allocation2 + $0x88] sm:$0xff]  ;;  %vm936_vm6 = vcmask 519168  }
  0x19   :  { %1043 = vmatprep.mubr.msk.f32.mxu1 %vm166_vm1, %v1325_v16  ;;  %v270_v35 = vsub.s32 %v267_v34, %v1358_v33  ;;  %v316_v44 = vrot.slane %v1368_v40, %v291_v39  ;;  %v328_v60 = vrot.slane %v1368_v40, %v327_v59  ;;  %v52_v14 = vld [vmem:[#allocation2 + $0x80] sm:$0xff]  ;;  %v55_v19 = vld [vmem:[#allocation2 + $0x98] sm:$0xff]  ;;  %v57_v30 = vld [vmem:[#allocation2 + $0xa8] sm:$0xff]  ;;  %vm941_vm7 = vcmask 781824  }
  0x1a   :  { %v160_v13 = vrot.slane %v1368_v40, %v159_v12  ;;  %v48_v20 = vld [vmem:[#allocation2 + $0x60] sm:$0xff]  ;;  %v58_v34 = vld [vmem:[#allocation2 + $0xb0] sm:$0xff]  ;;  %vm943_vm8 = vcmask 1044224  }
  0x1b   :  { %1144 = vmatpush3.bf16.msra.mxu1 %v1141_v9  ;;  %1136 = vmatpush3.bf16.msra.mxu0 %v1135_v18  ;;  %v1154_v18 = vpack.c.bf16 %v53_v15, %v52_v14 }
  0x1c   :  { %1146 = vmatprep.subr.bf16.mxu1 %v1145_v17  ;;  %1153 = vmatprep.subr.bf16.mxu0 %v1268_v0 }
  0x1f   :  { %1148 = vmatpush3.bf16.msra.mxu1 %v1145_v17  ;;  %v54_v17 = vld [vmem:[#allocation2 + $0x90] sm:$0xff] }
  0x20   :  { %1150 = vmatprep.subr.bf16.mxu1 %v1149_v21 }
  0x23   :  { %1152 = vmatpush3.bf16.msra.mxu1 %v1149_v21  ;;  %v49_v21 = vld [vmem:[#allocation2 + $0x68] sm:$0xff] }
  0x24   :  { %1165 = vmatprep.subr.bf16.mxu1 %v1268_v0 }
  0x26   :  { %1044 = vmatmul.mubr.msk.f32.vlgmr.msra.gmra.mrb[0].mxu1 %vm166_vm1, %v1334_v22 }
  0x27   :  { %1046 = vmatprep.mubr.msk.f32.mxu1 %vm166_vm1, %v1339_v23 }
  0x2a   :  { %1047 = vmatmul.mubr.msk.f32.gmra.mrb[2].mxu1 %vm166_vm1, %v1349_v24 }
  0x2b   :  { %1076 = vmatprep.mubr.msk.f32.mxu1 %vm1269_vm0, %v1270_v1 }
  0x86   :  { %v83_v25 = vpop.permute.xlu0 %82 }
  0x87   :  { %1025 = vmatmul.mubr.msk.f32.vlgmr.msra.gmra.mrb[0].mxu0 %vm84_vm2, %v83_v25  ;;  %v1157_v25 = vpack.c.bf16 %v55_v19, %v54_v17 }
  0x88   :  { %1065 = vmatprep.mubr.msk.f32.mxu0 %vm1269_vm0, %v1270_v1  ;;  %1155 = vmatpush3.bf16.msra.mxu0 %v1154_v18 }
  0x89   :  { %1156 = vmatprep.subr.bf16.mxu0 %v1268_v0 }
  0x8c   :  { %1158 = vmatpush3.bf16.msra.mxu0 %v1157_v25 }
  0x8d   :  { %1159 = vmatprep.subr.bf16.mxu0 %v1268_v0 }
  0xf9   :  { %v1045_v26 = vpop.f32.mrb[0].mxu1 }
  0xfa   :  { %v245_v27 = vpop.f32.mrb[1].mxu1 }
  0xfd   :  { %v1048_v28 = vpop.f32.mrb[2].mxu1 }
  0xfe   :  { %v255_v29 = vpop.f32.mrb[3].mxu1 }
 0x15a   :  { %v1361_v36 = vpop.f32.mrb[0].mxu0 }
 0x15b   :  { %v271_v37 = vrot.slane %v1361_v36, %v270_v35  ;;  %v1026_v38 = vpop.f32.mrb[1].mxu0 }
 0x15d   :  { %v272_v41 = vcombine.high %v271_v37, %v271_v37  ;;  %v279_v42 = vrot.slane %v271_v37, %v270_v35 }
 0x15f   :  { %v286_v43 = vrot.slane %v272_v41, %v270_v35  ;;  %v292_v45 = vrot.slane %v279_v42, %v291_v39  ;;  %v287_v46 = vcombine.high %v279_v42, %v279_v42  ;;  %v59_v35 = vld [vmem:[#allocation2 + $0xb8] sm:$0xff] }
 0x160   :  { %v1163_v37 = vpack.c.bf16 %v59_v35, %v58_v34 }
 0x161   :  { %v296_v47 = vrot.slane %v286_v43, %v291_v39  ;;  %v309_v48 = vadd.f32 %v292_v45, %v245_v27  ;;  %v288_v49 = vcombine.high %v286_v43, %v286_v43  ;;  %v300_v50 = vrot.slane %v287_v46, %v291_v39  ;;  %v50_v27 = vld [vmem:[#allocation2 + $0x70] sm:$0xff] }
 0x163   :  { %v310_v51 = vadd.f32 %v1045_v26, %v296_v47  ;;  %v317_v52 = vadd.f32 %v316_v44, %v309_v48  ;;  %v304_v53 = vrot.slane %v288_v49, %v291_v39  ;;  %v311_v54 = vadd.f32 %v300_v50, %v255_v29  ;;  %v56_v29 = vld [vmem:[#allocation2 + $0xa0] sm:$0xff] }
 0x164   :  { %v1166_v26 = vpack.c.bf16 %v49_v21, %v48_v20  ;;  %v1160_v32 = vpack.c.bf16 %v57_v30, %v56_v29 }
 0x165   :  { %v318_v55 = vadd.f32 %v316_v44, %v310_v51  ;;  %1211 = vtanh.f32 %v317_v52  ;;  %v312_v56 = vadd.f32 %v1048_v28, %v304_v53  ;;  %v319_v57 = vadd.f32 %v316_v44, %v311_v54  ;;  %v51_v28 = vld [vmem:[#allocation2 + $0x78] sm:$0xff] }
 0x166   :  { %1167 = vmatpush3.bf16.msra.mxu1 %v1166_v26  ;;  %v1169_v31 = vpack.c.bf16 %v51_v28, %v50_v27  ;;  %1161 = vmatpush3.bf16.msra.mxu0 %v1160_v32 }
 0x167   :  { %1213 = vtanh.f32 %v318_v55  ;;  %v320_v58 = vadd.f32 %v316_v44, %v312_v56  ;;  %1168 = vmatprep.subr.bf16.mxu1 %v1268_v0  ;;  %1162 = vmatprep.subr.bf16.mxu0 %v1268_v0 }
 0x168   :  { %1215 = vtanh.f32 %v319_v57 }
 0x169   :  { %1217 = vtanh.f32 %v320_v58 }
 0x16a   :  { %1170 = vmatpush3.bf16.msra.mxu1 %v1169_v31  ;;  %1164 = vmatpush3.bf16.msra.mxu0 %v1163_v37 }
 0x16b   :  { %1183 = vmatprep.subr.bf16.mxu1 %v1268_v0  ;;  %1171 = vmatprep.subr.bf16.mxu0 %v1268_v0 }
 0x16d   :  { %1077 = vmatmul.mubr.msk.f32.vlgmr.msra.gmra.mrb[4].mxu1 %vm84_vm2, %v1318_v2 }
 0x16e   :  { %1106 = vmatprep.mubr.msk.f32.mxu1 %vm1269_vm0, %v1270_v1 }
 0x16f   :  { %v1212_v61 = vpop.eup %1211 }
 0x170   :  { %v329_v62 = vmul.f32 %v1212_v61, %v328_v60 }
 0x171   :  { %v1214_v63 = vpop.eup %1213 }
 0x172   :  { %v1216_v3 = vpop.eup %1215  ;;  %v333_v4 = vsel %vm84_vm2, %v329_v62, 0.0  ;;  %v330_v5 = vmul.f32 %v1214_v63, %v328_v60 }
 0x173   :  { %334 = vadd.xlane.f32.xlu0 %v333_v4  ;;  %v331_v7 = vmul.f32 %v1216_v3, %v328_v60  ;;  %v1218_v8 = vpop.eup %1217 }
 0x174   :  { %v336_v6 = vsel %vm84_vm2, %v330_v5, 0.0  ;;  %v332_v10 = vmul.f32 %v1218_v8, %v328_v60 }
 0x175   :  { %337 = vadd.xlane.f32.xlu1 %v336_v6  ;;  %v339_v9 = vsel %vm84_vm2, %v331_v7, 0.0 }
 0x176   :  { %v342_v11 = vsel %vm84_vm2, %v332_v10, 0.0 }
 0x179   :  { %340 = vadd.xlane.f32.xlu1 %v339_v9 }
 0x17d   :  { %343 = vadd.xlane.f32.xlu1 %v342_v11 }
 0x18e   :  { %162 = vrot.lane.b32.xlu1 %v160_v13, %s1273_s3 }
 0x200   :  { %v335_v38 = vpop.xlane.xlu0 %334 }
 0x201   :  { %v345_v39 = vrot.slane %v335_v38, 4 }
 0x202   :  { %v338_v41 = vpop.xlane.xlu1 %337 }
 0x203   :  { %v346_v42 = vmax.f32 %v335_v38, %v345_v39  ;;  %v351_v43 = vrot.slane %v338_v41, 4 }
 0x205   :  { %v347_v44 = vrot.slane %v346_v42, 2  ;;  %v352_v45 = vmax.f32 %v338_v41, %v351_v43 }
 0x206   :  { %v341_v46 = vpop.xlane.xlu1 %340 }
 0x207   :  { %v348_v47 = vmax.f32 %v346_v42, %v347_v44  ;;  %v353_v48 = vrot.slane %v352_v45, 2  ;;  %v357_v49 = vrot.slane %v341_v46, 4 }
 0x209   :  { %v349_v50 = vrot.slane %v348_v47, 1  ;;  %v354_v51 = vmax.f32 %v352_v45, %v353_v48  ;;  %v358_v52 = vmax.f32 %v341_v46, %v357_v49 }
 0x20a   :  { %v344_v53 = vpop.xlane.xlu1 %343 }
 0x20b   :  { %v350_v54 = vmax.f32 %v348_v47, %v349_v50  ;;  %v355_v55 = vrot.slane %v354_v51, 1  ;;  %v359_v56 = vrot.slane %v358_v52, 2  ;;  %v363_v57 = vrot.slane %v344_v53, 4 }
 0x20d   :  { %v369_v58 = vsub.f32 %v335_v38, %v350_v54  ;;  %v356_v59 = vmax.f32 %v354_v51, %v355_v55  ;;  %v360_v60 = vmax.f32 %v358_v52, %v359_v56  ;;  %v364_v61 = vmax.f32 %v344_v53, %v363_v57 }
 0x20e   :  { %v163_v62 = vpop.permute.xlu1 %162 }
 0x20f   :  { %v373_v63 = vmul.f32 1.442695, %v369_v58  ;;  %v370_v3 = vsub.f32 %v338_v41, %v356_v59  ;;  %v361_v4 = vrot.slane %v360_v60, 1  ;;  %v365_v5 = vrot.slane %v364_v61, 2 }
 0x210   :  { %v165_v6 = vadd.f32 %v163_v62, %v1361_v36 }
 0x211   :  { %1219 = vpow2.f32 %v373_v63  ;;  %v375_v7 = vmul.f32 1.442695, %v370_v3  ;;  %v362_v8 = vmax.f32 %v360_v60, %v361_v4  ;;  %v366_v9 = vmax.f32 %v364_v61, %v365_v5 }
 0x212   :  { %605 = vrot.lane.b32.xlu1 %v165_v6, %s1271_s5 }
 0x213   :  { %1221 = vpow2.f32 %v375_v7  ;;  %v371_v10 = vsub.f32 %v341_v46, %v362_v8  ;;  %v367_v11 = vrot.slane %v366_v9, 1 }
 0x215   :  { %v377_v12 = vmul.f32 1.442695, %v371_v10  ;;  %v368_v13 = vmax.f32 %v366_v9, %v367_v11 }
 0x216   :  { %615 = vrot.lane.b32.xlu1 %v165_v6, %s1273_s3 }
 0x217   :  { %1223 = vpow2.f32 %v377_v12  ;;  %v372_v14 = vsub.f32 %v344_v53, %v368_v13 }
 0x219   :  { %v379_v15 = vmul.f32 1.442695, %v372_v14 }
 0x21b   :  { %v1220_v17 = vpop.eup %1219  ;;  %1225 = vpow2.f32 %v379_v15 }
 0x21c   :  { %v381_v18 = vrot.slane %v1220_v17, 4 }
 0x21d   :  { %v1222_v36 = vpop.eup %1221 }
 0x21e   :  { %v382_v19 = vadd.f32 %v1220_v17, %v381_v18  ;;  %v387_v20 = vrot.slane %v1222_v36, 4 }
 0x220   :  { %v383_v21 = vrot.slane %v382_v19, 2  ;;  %v388_v25 = vadd.f32 %v1222_v36, %v387_v20 }
 0x221   :  { %v1224_v26 = vpop.eup %1223 }
 0x222   :  { %v384_v27 = vadd.f32 %v383_v21, %v382_v19  ;;  %v389_v28 = vrot.slane %v388_v25, 2  ;;  %v393_v29 = vrot.slane %v1224_v26, 4 }
 0x224   :  { %v385_v30 = vrot.slane %v384_v27, 1  ;;  %v390_v31 = vadd.f32 %v389_v28, %v388_v25  ;;  %v394_v32 = vadd.f32 %v1224_v26, %v393_v29 }
 0x225   :  { %v1226_v34 = vpop.eup %1225 }
 0x226   :  { %v386_v35 = vadd.f32 %v385_v30, %v384_v27  ;;  %v391_v37 = vrot.slane %v390_v31, 1  ;;  %v395_v38 = vrot.slane %v394_v32, 2  ;;  %v399_v39 = vrot.slane %v1226_v34, 4  ;;  %v65_v27 = vld [vmem:[#allocation2 + $0xe8] sm:$0xff] }
 0x228   :  { %1227 = vrcp.f32 %v386_v35  ;;  %v392_v41 = vadd.f32 %v391_v37, %v390_v31  ;;  %v396_v42 = vadd.f32 %v395_v38, %v394_v32  ;;  %v400_v43 = vadd.f32 %v1226_v34, %v399_v39  ;;  %v67_v35 = vld [vmem:[#allocation2 + $0xf8] sm:$0xff]  ;;  %v68_v39 = vld [vmem:[#allocation2 + $0x100] sm:$0xff] }
 0x22a   :  { %1229 = vrcp.f32 %v392_v41  ;;  %v397_v44 = vrot.slane %v396_v42, 1  ;;  %v401_v45 = vrot.slane %v400_v43, 2  ;;  %v69_v41 = vld [vmem:[#allocation2 + $0x108] sm:$0xff] }
 0x22c   :  { %v402_v46 = vadd.f32 %v401_v45, %v400_v43  ;;  %v398_v47 = vadd.f32 %v397_v44, %v396_v42  ;;  %v1178_v42 = vpack.c.bf16 %v69_v41, %v68_v39  ;;  %v70_v43 = vld [vmem:[#allocation2 + $0x110] sm:$0xff]  ;;  %v71_v44 = vld [vmem:[#allocation2 + $0x118] sm:$0xff] }
 0x22d   :  { %v1181_v45 = vpack.c.bf16 %v71_v44, %v70_v43 }
 0x22e   :  { %v403_v48 = vrot.slane %v402_v46, 1  ;;  %1231 = vrcp.f32 %v398_v47 }
 0x230   :  { %v404_v49 = vadd.f32 %v403_v48, %v402_v46  ;;  %v601_v48 = vsub.s32 2, %v1358_v33 }
 0x232   :  { %v1228_v50 = vpop.eup %1227  ;;  %1233 = vrcp.f32 %v404_v49  ;;  %v602_v49 = vrot.slane %v1368_v40, %v601_v48 }
 0x233   :  { %v406_v51 = vmul.f32 %v1228_v50, %v1220_v17 }
 0x234   :  { %v1230_v52 = vpop.eup %1229 }
 0x235   :  { %v408_v53 = vmul.f32 %v1230_v52, %v1222_v36  ;;  %v413_v54 = vmul.f32 %v406_v51, %v1325_v16 }
 0x237   :  { %v414_v55 = vmul.f32 %v408_v53, %v1334_v22  ;;  %v417_v56 = vsel %vm166_vm1, %v413_v54, 0.0 }
 0x238   :  { %v1232_v57 = vpop.eup %1231  ;;  %v418_v58 = vrot.slane %v417_v56, 4 }
 0x239   :  { %v410_v59 = vmul.f32 %v1232_v57, %v1224_v26  ;;  %v424_v60 = vsel %vm166_vm1, %v414_v55, 0.0  ;;  %v64_v26 = vld [vmem:[#allocation2 + $0xe0] sm:$0xff] }
 0x23a   :  { %v419_v61 = vadd.f32 %v418_v58, %v417_v56  ;;  %v425_v62 = vrot.slane %v424_v60, 4  ;;  %v1172_v31 = vpack.c.bf16 %v65_v27, %v64_v26  ;;  %v77_v26 = vld [vmem:[#allocation2 + $0x148] sm:$0xff]  ;;  %v78_v27 = vld [vmem:[#allocation2 + $0x150] sm:$0xff] }
 0x23b   :  { %v415_v63 = vmul.f32 %v410_v59, %v1339_v23 }
 0x23c   :  { %v1234_v3 = vpop.eup %1233  ;;  %v426_v4 = vadd.f32 %v425_v62, %v424_v60  ;;  %v420_v7 = vrot.slane %v419_v61, 2 }
 0x23d   :  { %v412_v5 = vmul.f32 %v1234_v3, %v1226_v34  ;;  %v431_v6 = vsel %vm166_vm1, %v415_v63, 0.0  ;;  %v66_v34 = vld [vmem:[#allocation2 + $0xf0] sm:$0xff] }
 0x23e   :  { %v427_v16 = vrot.slane %v426_v4, 2  ;;  %v432_v8 = vrot.slane %v431_v6, 4  ;;  %v421_v12 = vadd.f32 %v420_v7, %v419_v61  ;;  %v1175_v38 = vpack.c.bf16 %v67_v35, %v66_v34  ;;  %v61_v7 = vld [vmem:[#allocation2 + $0xc8] sm:$0xff] }
 0x23f   :  { %v416_v22 = vmul.f32 %v412_v5, %v1349_v24  ;;  %v851_v34 = vsub.s32 4, %v1358_v33 }
 0x240   :  { %v428_v9 = vadd.f32 %v427_v16, %v426_v4  ;;  %v433_v10 = vadd.f32 %v432_v8, %v431_v6  ;;  %v422_v18 = vrot.slane %v421_v12, 1  ;;  %v595_v46 = vpop.f32.mrb[4].mxu1  ;;  %v60_v6 = vld [vmem:[#allocation2 + $0xc0] sm:$0xff]  ;;  %v62_v16 = vld [vmem:[#allocation2 + $0xd0] sm:$0xff] }
 0x241   :  { %v438_v11 = vsel %vm166_vm1, %v416_v22, 0.0  ;;  %v1078_v47 = vpop.f32.mrb[5].mxu1  ;;  %v1184_v8 = vpack.c.bf16 %v61_v7, %v60_v6  ;;  %v63_v22 = vld [vmem:[#allocation2 + $0xd8] sm:$0xff]  ;;  %v852_v35 = vrot.slane %v1368_v40, %v851_v34 }
 0x242   :  { %v434_v13 = vrot.slane %v433_v10, 2  ;;  %v439_v14 = vrot.slane %v438_v11, 4  ;;  %v429_v15 = vrot.slane %v428_v9, 1  ;;  %v423_v24 = vadd.f32 %v422_v18, %v421_v12 }
 0x243   :  { %1185 = vmatpush3.bf16.msra.mxu1 %v1184_v8 }
 0x244   :  { %v435_v17 = vadd.f32 %v434_v13, %v433_v10  ;;  %v440_v23 = vadd.f32 %v439_v14, %v438_v11  ;;  %v430_v20 = vadd.f32 %v429_v15, %v428_v9  ;;  %v1187_v9 = vpack.c.bf16 %v63_v22, %v62_v16  ;;  %1186 = vmatprep.subr.bf16.mxu1 %v1268_v0 }
 0x246   :  { %v436_v36 = vrot.slane %v435_v17, 1  ;;  %v441_v19 = vrot.slane %v440_v23, 2  ;;  %v450_v30 = vsel %vm449_vm3, %v430_v20, %v423_v24 }
 0x247   :  { %1188 = vmatpush3.bf16.msra.mxu1 %v1187_v9 }
 0x248   :  { %v442_v21 = vadd.f32 %v441_v19, %v440_v23  ;;  %v437_v25 = vadd.f32 %v436_v36, %v435_v17  ;;  %1189 = vmatprep.subr.bf16.mxu1 %v1268_v0  ;;  %v72_v17 = vld [vmem:[#allocation2 + $0x120] sm:$0xff]  ;;  %v73_v23 = vld [vmem:[#allocation2 + $0x128] sm:$0xff]  ;;  %v74_v36 = vld [vmem:[#allocation2 + $0x130] sm:$0xff] }
 0x249   :  { %v1190_v18 = vpack.c.bf16 %v73_v23, %v72_v17  ;;  %v75_v19 = vld [vmem:[#allocation2 + $0x138] sm:$0xff] }
 0x24a   :  { %v443_v28 = vrot.slane %v442_v21, 1  ;;  %v452_v32 = vsel %vm451_vm4, %v437_v25, %v450_v30  ;;  %v76_v25 = vld [vmem:[#allocation2 + $0x140] sm:$0xff] }
 0x24b   :  { %v1196_v24 = vpack.c.bf16 %v77_v26, %v76_v25 }
 0x24c   :  { %v444_v29 = vadd.f32 %v443_v28, %v442_v21  ;;  %v1193_v21 = vpack.c.bf16 %v75_v19, %v74_v36  ;;  %v79_v28 = vld [vmem:[#allocation2 + $0x158] sm:$0xff] }
 0x24e   :  { %v454_v37 = vsel %vm453_vm5, %v444_v29, %v452_v32  ;;  %v1199_v29 = vpack.c.bf16 %v79_v28, %v78_v27 }
 0x24f   :  { %1066 = vmatmul.mubr.msk.f32.vlgmr.msra.gmra.mrb[2].mxu0 %vm166_vm1, %v454_v37 }
 0x250   :  { %1173 = vmatpush3.bf16.msra.mxu0 %v1172_v31  ;;  %1095 = vmatprep.mubr.msk.f32.mxu0 %vm1269_vm0, %v1270_v1 }
 0x251   :  { %1174 = vmatprep.subr.bf16.mxu0 %v1268_v0 }
 0x254   :  { %1176 = vmatpush3.bf16.msra.mxu0 %v1175_v38 }
 0x255   :  { %1177 = vmatprep.subr.bf16.mxu0 %v1268_v0 }
 0x258   :  { %1179 = vmatpush3.bf16.msra.mxu0 %v1178_v42 }
 0x259   :  { %1180 = vmatprep.subr.bf16.mxu0 %v1268_v0 }
 0x25c   :  { %1182 = vmatpush3.bf16.msra.mxu0 %v1181_v45 }
 0x25d   :  { %1195 = vmatprep.subr.bf16.mxu0 %v1268_v0 }
 0x25f   :  { %1096 = vmatmul.mubr.msk.f32.vlgmr.msra.gmra.mrb[4].mxu0 %vm166_vm1, %v454_v37 }
 0x260   :  { %1128 = vmatprep.mubr.msk.f32.mxu0 %vm1269_vm0, %v1270_v1  ;;  %1197 = vmatpush3.bf16.msra.mxu0 %v1196_v24 }
 0x261   :  { %1198 = vmatprep.subr.bf16.mxu0 %v1268_v0 }
 0x264   :  { %1200 = vmatpush3.bf16.msra.mxu0 %v1199_v29 }
 0x284   :  { %v606_v54 = vpop.permute.xlu1 %605 }
 0x288   :  { %v616_v63 = vpop.permute.xlu1 %615 }
 0x322   :  { %v523_v50 = vpop.f32.mrb[2].mxu0 }
 0x323   :  { %v596_v51 = vadd.f32 %v595_v46, %v523_v50  ;;  %v1067_v52 = vpop.f32.mrb[3].mxu0 }
 0x325   :  { %v603_v53 = vadd.f32 %v602_v49, %v596_v51 }
 0x327   :  { %v608_v55 = vadd.f32 %v606_v54, %v603_v53 }
 0x329   :  { %v609_v56 = vsub.f32 0.0, %v608_v55 }
 0x32b   :  { %v610_v57 = vmul.f32 1.442695, %v609_v56 }
 0x32d   :  { %1235 = vpow2.f32 %v610_v57 }
 0x332   :  { %v699_v58 = vpop.f32.mrb[4].mxu0 }
 0x333   :  { %v1097_v59 = vpop.f32.mrb[5].mxu0 }
 0x337   :  { %v1236_v60 = vpop.eup %1235 }
 0x338   :  { %v612_v61 = vadd.f32 1.0, %v1236_v60 }
 0x33a   :  { %1237 = vrcp.f32 %v612_v61 }
 0x344   :  { %v1238_v62 = vpop.eup %1237 }
 0x345   :  { %v618_v3 = vmul.f32 %v1238_v62, %v616_v63  ;;  %v625_v11 = vsub.f32 1.0, %v1238_v62  ;;  %v631_v13 = vmul.f32 %v1238_v62, %v1318_v2 }
 0x347   :  { %620 = vrot.lane.b32.xlu0 %v618_v3, %s1274_s13 }
 0x3b9   :  { %v621_v4 = vpop.permute.xlu0 %620 }
 0x3ba   :  { %v623_v5 = vadd.f32 %v621_v4, %v603_v53 }
 0x3bc   :  { %1239 = vtanh.f32 %v623_v5 }
 0x3c6   :  { %v1240_v10 = vpop.eup %1239 }
 0x3c7   :  { %627 = vrot.lane.b32.xlu1 %v1240_v10, %s1271_s5 }
 0x439   :  { %v628_v12 = vpop.permute.xlu1 %627 }
 0x43a   :  { %v630_v14 = vmul.f32 %v628_v12, %v625_v11 }
 0x43c   :  { %v632_v15 = vadd.f32 %v631_v13, %v630_v14 }
 0x43e   :  { %704 = vrot.lane.b32.xlu1 %v632_v15, %s1271_s5 }
 0x4b0   :  { %v705_v20 = vpop.permute.xlu1 %704 }
 0x4b1   :  { %1107 = vmatmul.mubr.msk.f32.vlgmr.msra.gmra.mrb[6].mxu1 %vm84_vm2, %v705_v20 }
 0x4b2   :  { %1191 = vmatpush3.bf16.msra.mxu1 %v1190_v18  ;;  %1117 = vmatprep.mubr.msk.f32.mxu1 %vm1269_vm0, %v1270_v1 }
 0x4b3   :  { %1192 = vmatprep.subr.bf16.mxu1 %v1268_v0  ;;  %v861_v0 = vsub.s32 5, %v1358_v33 }
 0x4b5   :  { %v862_v43 = vrot.slane %v1368_v40, %v861_v0 }
 0x4b6   :  { %1194 = vmatpush3.bf16.msra.mxu1 %v1193_v21 }
 0x4b9   :  { %1118 = vmatmul.mubr.msk.f32.vlgmr.msra.gmra.mrb[8].mxu1 %vm84_vm2, %v1318_v2 }
 0x584   :  { %v774_v30 = vpop.f32.mrb[6].mxu1 }
 0x585   :  { %v775_v31 = vadd.f32 %v774_v30, %v699_v58  ;;  %v1108_v32 = vpop.f32.mrb[7].mxu1 }
 0x58c   :  { %v844_v37 = vpop.f32.mrb[8].mxu1 }
 0x58d   :  { %v848_v38 = vadd.f32 %v844_v37, %v775_v31  ;;  %v1119_v2 = vpop.f32.mrb[9].mxu1 }
 0x58f   :  { %v853_v39 = vadd.f32 %v852_v35, %v848_v38 }
 0x591   :  { %855 = vrot.lane.b32.xlu1 %v853_v39, %s1271_s5 }
 0x595   :  { %938 = vrot.lane.b32.xlu1 %v632_v15, %s1273_s3 }
 0x603   :  { %v856_v41 = vpop.permute.xlu1 %855 }
 0x604   :  { %v858_v42 = vmax.f32 %v853_v39, %v856_v41 }
 0x606   :  { %1129 = vmatmul.mubr.msk.f32.vlgmr.msra.gmra.mrb[6].mxu0 %vm84_vm2, %v858_v42 }
 0x607   :  { %v939_v47 = vpop.permute.xlu1 %938 }
 0x6d9   :  { %v932_v44 = vpop.f32.mrb[6].mxu0 }
 0x6da   :  { %v933_v45 = vadd.f32 %v932_v44, %v862_v43  ;;  %v1130_v46 = vpop.f32.mrb[7].mxu0 }
 0x6dc   :  { %937 = vst.msk [vmem:[%s1446_s4] sm:$0xf] %vm936_vm6, %v933_v45 }
 0x6dd   :  { %942 = vst.msk [vmem:[%s1446_s4] sm:$0xf] %vm941_vm7, %v939_v47 }
 0x6de   :  { %944 = vst.msk [vmem:[%s1446_s4] sm:$0xf] %vm943_vm8, %v1270_v1 }
 0x6df   :  { %949 = vsyncpa [#allocation3], 1 }

</bundles_post_ra>
